<compile_context>
chip_gen: v7x
topology: tpu7x:2x2x1
jax: 0.10.0
libtpu: 0.0.40
codegen_flags: <defaults>
</compile_context>

<pallas_src>
import jax
import jax.numpy as jnp
from jax.experimental import pallas as pl
from jax.experimental.pallas import tpu as pltpu

IN_FEATURES = 10            # nn.Linear(10, 1)
GROUP = 64                  # logical rows packed per lane-row: 64 * 10 = 640 lanes
LANE_W = GROUP * IN_FEATURES


def _round_up(n, m):
    return ((n + m - 1) // m) * m


def _dense_ref(x, w, b):
    """Exact f32 reference / small-batch fallback: x @ w.T + b on the VPU."""
    y = jnp.sum(x * w.reshape(1, IN_FEATURES), axis=-1, keepdims=True)
    return (y + b.reshape(1, 1)).astype(jnp.float32)


def _staircase_weights(w_row, dtype):
    """(640, 64) matrix with W[10*j + c, j] = w[c] for c in [0, 10); 0 elsewhere."""
    k = jnp.arange(LANE_W)[:, None]                   # (640, 1)
    j = jnp.arange(GROUP)[None, :]                    # (1, 64)
    c = k - IN_FEATURES * j
    valid = (c >= 0) & (c < IN_FEATURES)
    gathered = w_row[jnp.clip(c, 0, IN_FEATURES - 1)]
    return jnp.where(valid, gathered, 0.0).astype(dtype)


def _linear10x1_kernel(x_ref, w_ref, b_ref, o_ref):
    # x_ref: (rt, 640) f32 VMEM -- 64 logical rows per lane-row, fully lane-dense.
    # w_ref: (640, 64) f32 VMEM -- staircase weights, resident across the grid.
    # b_ref: (1,)      f32 SMEM -- scalar bias.
    # o_ref: (rt, 64)  f32 VMEM -- y for the same 64-row groups (lane-dense).
    y = jnp.dot(x_ref[...], w_ref[...], preferred_element_type=jnp.float32)
    o_ref[...] = (y + b_ref[0]).astype(o_ref.dtype)


def _linear10x1_pallas(x_main, w, b, row_tile):
    """Pallas path; x_main has B_main rows with B_main % GROUP == 0."""
    b_main, _ = x_main.shape
    num_lane_rows = b_main // GROUP
    xg = x_main.reshape(num_lane_rows, LANE_W)        # free row-major reshape
    w_stair = _staircase_weights(w.reshape(IN_FEATURES), x_main.dtype)
    b1 = b.reshape(1).astype(jnp.float32)

    # Tile size in lane-rows: as large as row_tile allows, but aim for >= 4
    # grid steps (so v7x's two TensorCores get balanced work) and never exceed
    # the (sublane-rounded) array extent.  Always a multiple of 8 sublanes.
    rt = min(max(8, row_tile // GROUP), _round_up(pl.cdiv(num_lane_rows, 4), 8))
    rt = max(8, min(rt, _round_up(num_lane_rows, 8)))
    grid = (pl.cdiv(num_lane_rows, rt),)              # partial last block is masked

    yg = pl.pallas_call(
        _linear10x1_kernel,
        out_shape=jax.ShapeDtypeStruct((num_lane_rows, GROUP), jnp.float32),
        grid=grid,
        in_specs=[
            # If profiles show exposed DMA (most likely on v7x at 3.2 TB/s),
            # add pipeline_mode=pl.Buffered(3) here (one extra 5 MiB buffer).
            pl.BlockSpec((rt, LANE_W), lambda i: (i, 0)),
            pl.BlockSpec((LANE_W, GROUP), lambda i: (0, 0)),      # stays resident
            pl.BlockSpec(memory_space=pltpu.MemorySpace.SMEM),    # scalar bias
        ],
        out_specs=pl.BlockSpec((rt, GROUP), lambda i: (i, 0)),
        compiler_params=pltpu.CompilerParams(
            dimension_semantics=("parallel",),
        ),
    )(xg, w_stair, b1)
    return yg.reshape(b_main, 1)                       # free row-major reshape


def simple_model_forward(x, w, b, *, row_tile=131072, min_pallas_rows=4096,
                         force_pallas=False):
    """y = x @ w.T + b, matching torch nn.Linear(10, 1).

    x: (B, 10) f32, w: (1, 10) f32 (torch layout), b: (1,) f32 -> (B, 1) f32.
    row_tile: input rows per grid step (131072 ~= 5 MiB / x buffer; sized for
    v5e's 16 MiB scoped-VMEM default -- v6e/v7x have headroom to raise it).
    """
    B, in_f = x.shape
    out_f, in_f2 = w.shape
    assert in_f == IN_FEATURES and in_f2 == IN_FEATURES and out_f == 1, \
        "kernel specialized for nn.Linear(10, 1)"

    if not force_pallas and B < min_pallas_rows:
        # A few hundred FLOPs: pallas_call launch / DMA setup dominates, and
        # XLA fuses this trivially -- skip the kernel entirely.
        return _dense_ref(x, w, b).astype(x.dtype)

    b_main = (B // GROUP) * GROUP
    parts = []
    if b_main > 0:
        x_main = x if b_main == B else x[:b_main]      # slice only for ragged B
        parts.append(_linear10x1_pallas(x_main, w, b, row_tile))
    if b_main < B:
        parts.append(_dense_ref(x[b_main:], w, b))     # < 64 leftover rows
    y = parts[0] if len(parts) == 1 else jnp.concatenate(parts, axis=0)
    return y.astype(x.dtype)


if __name__ == "__main__":
    key = jax.random.PRNGKey(0)
    k_x, k_w, k_b = jax.random.split(key, 3)

    IN, OUT = IN_FEATURES, 1
    # torch nn.Linear default init: U(-1/sqrt(in), 1/sqrt(in)), weight (OUT, IN).
    bound = float(IN) ** -0.5
    w = jax.random.uniform(k_w, (OUT, IN), jnp.float32, -bound, bound)
    b = jax.random.uniform(k_b, (OUT,), jnp.float32, -bound, bound)

    # Small demo batch, forced through the Pallas path (grid of 2 steps).
    B = 1024
    x = jax.random.normal(k_x, (B, IN), jnp.float32)
    y = simple_model_forward(x, w, b, force_pallas=True)
    jax.block_until_ready(y)
    assert y.shape == (B, OUT)
    assert jnp.allclose(y, _dense_ref(x, w, b), atol=1e-5, rtol=1e-5)

    # Robustness checks: tiny batch (plain-JAX dispatch) and a ragged batch
    # (partial last grid block + <64-row tail handled in JAX).
    for b_test, force in ((8, False), (1000, True)):
        x_t = jax.random.normal(jax.random.fold_in(k_x, b_test), (b_test, IN),
                                jnp.float32)
        y_t = simple_model_forward(x_t, w, b, force_pallas=force)
        jax.block_until_ready(y_t)
        assert y_t.shape == (b_test, OUT)
        assert jnp.allclose(y_t, _dense_ref(x_t, w, b), atol=1e-5, rtol=1e-5)

    print("KERNEL_OK")
</pallas_src>

<mosaic_0001>
module attributes {stable_mosaic.version = 11 : i64} {
  func.func @_linear10x1_kernel(%arg0: i32, %arg1: memref<8x640xf32, #tpu.memory_space<vmem>>, %arg2: memref<640x64xf32, #tpu.memory_space<vmem>>, %arg3: memref<1xf32, #tpu.memory_space<smem>>, %arg4: memref<8x64xf32, #tpu.memory_space<vmem>>) attributes {dimension_semantics = [#tpu.dimension_semantics<parallel>], iteration_bounds = array<i64: 2>, scalar_prefetch = 0 : i64, scratch_operands = 0 : i64, tpu.core_type = #tpu.core_type<tc>, window_params = [{transform_indices = @transform_0, window_bounds = array<i64: 8, 640>}, {pipeline_mode = #tpu.pipeline_mode<synchronous>, transform_indices = @transform_1, window_bounds = array<i64: 640, 64>}, {transform_indices = @transform_2, window_bounds = array<i64: 1>}, {transform_indices = @transform_3, window_bounds = array<i64: 8, 64>}]} {
    %c0 = arith.constant 0 : index
    %c0_0 = arith.constant 0 : index
    %0 = vector.load %arg1[%c0, %c0_0] : memref<8x640xf32, #tpu.memory_space<vmem>>, vector<8x640xf32>
    %c0_1 = arith.constant 0 : index
    %c0_2 = arith.constant 0 : index
    %1 = vector.load %arg2[%c0_1, %c0_2] : memref<640x64xf32, #tpu.memory_space<vmem>>, vector<640x64xf32>
    %cst = arith.constant dense<0.000000e+00> : vector<8x64xf32>
    %2 = tpu.matmul %0, %1, %cst {dimension_numbers = #tpu.dot_dimension_numbers<[1], [0], [0], [1], [0, 0, 1, 1], [], []>} : vector<8x640xf32>, vector<640x64xf32>, vector<8x64xf32> -> vector<8x64xf32>
    %c0_3 = arith.constant 0 : index
    %3 = memref.load %arg3[%c0_3] : memref<1xf32, #tpu.memory_space<smem>>
    %4 = vector.broadcast %3 : f32 to vector<8x64xf32>
    %5 = arith.addf %2, %4 : vector<8x64xf32>
    %c0_4 = arith.constant 0 : index
    %c0_5 = arith.constant 0 : index
    %6 = vector.load %arg4[%c0_4, %c0_5] : memref<8x64xf32, #tpu.memory_space<vmem>>, vector<8x64xf32>
    tpu.vector_store %arg4[%c0_4, %c0_5], %5 {strides = array<i32>} : memref<8x64xf32, #tpu.memory_space<vmem>>, vector<8x64xf32>,
    return
  }
  func.func @transform_0(%arg0: i32) -> (i32, i32) {
    %c0_i32 = arith.constant 0 : i32
    %c0_i32_0 = arith.constant 0 : i32
    return %arg0, %c0_i32 : i32, i32
  }
  func.func @transform_1(%arg0: i32) -> (i32, i32) {
    %c0_i32 = arith.constant 0 : i32
    %c0_i32_0 = arith.constant 0 : i32
    %c0_i32_1 = arith.constant 0 : i32
    return %c0_i32, %c0_i32_0 : i32, i32
  }
  func.func @transform_2(%arg0: i32) -> i32 {
    %c0_i32 = arith.constant 0 : i32
    %c0_i32_0 = arith.constant 0 : i32
    return %c0_i32 : i32
  }
  func.func @transform_3(%arg0: i32) -> (i32, i32) {
    %c0_i32 = arith.constant 0 : i32
    %c0_i32_0 = arith.constant 0 : i32
    return %arg0, %c0_i32 : i32, i32
  }
}

</mosaic_0001>

<bundles_post_ra>
// kernel: tpu_custom_call.1
= control target key start
LH: loop header
LB: loop body
LE: loop exit
PB: predicated region body
PF: predicated region fallthrough
CT: control target
= control target key end

     0   :  { %s1248_s0 = inlined_call_operand.vmem [shape: f32[16,640], index: 0, kind: input, shape index: {}]   ;;  %s1249_s1 = inlined_call_operand.vmem [shape: f32[640,64], index: 1, kind: input, shape index: {}]   ;;  %s1250_s2 = inlined_call_operand.<no memory space> [shape: f32[1], index: 2, kind: input, shape index: {}]   ;;  %s1251_s3 = inlined_call_operand.hbm [shape: f32[16,64], index: 3, kind: output, shape index: {}]  }
   0x1   :  { %8 = sst [smem:[#allocation2]] %s1250_s2 }
   0x2   :  { %9 = vsyncpa [#allocation4], 0 }
   0x3   :  { %11 = vsyncpa [#allocation4 + $0x1], 0  ;;  %s896_s14 = smov 0   ;;  %s898_s15 = smov 0  }
   0x4   :  { %s900_s16 = smov 0   ;;  %s902_s17 = smov 0  }
   0x5 LB: > { %s917_s2 = sadd.s32 4294967295, %s867_s17   ;;  %s542_s18 = sadd.s32 4294967294, %s867_s17   ;;  %s867_s17 = sphi %s902_s17, %s1257_s17   ;;  %s863_s16 = sphi %s900_s16, %s1256_s16   ;;  %s859_s15 = sphi %s898_s15, %s1255_s15   ;;  %s855_s14 = sphi %s896_s14, %s1254_s14  }
   0x6   : > { %s921_s19 = sadd.s32 1, %s867_s17   ;;  %s92_s20 = sadd.s32 1, %s863_s16 }
   0x7   : > { %s89_s21 = ssub.s32 %s867_s17, %s921_s19  ;;  %p102_p0 = scmp.ne.s32.totalorder %s863_s16, %s859_s15 }
   0x8   : > { %p90_p1 = scmp.eq.s32.totalorder %s89_s21, 0  ;;  %p103_p2 = scmp.eq.s32.totalorder %s917_s2, 1 }
   0x9   : > { %p108_p3 = scmp.ne.s32.totalorder %s859_s15, %s855_s14  ;;  %p109_p4 = scmp.eq.s32.totalorder %s542_s18, 1 }
   0xa   : > { %s932_s22 = scalar_select %p90_p1, %s863_s16, %s92_s20  }
   0xb   : > { %p934_p5 = por %p103_p2, %p102_p0  ;;  %p938_p6 = por %p109_p4, %p108_p3 }
   0xc   : > { %p545_p7 = scmp.ge.s32.totalorder %s867_s17, 1  ;;  %p141_p8 = scmp.lt.s32.totalorder %s867_s17, 3 }
   0xe   : > { %p142_p9 = pnand %p545_p7, %p141_p8 }
   0xf   : > { %v191_v0 = vld [vmem:[%s1249_s1 + $0x80] sm:$0xff] (!%p142_p9)  ;;  %v192_v1 = vld [vmem:[%s1249_s1 + $0x88] sm:$0xff] (!%p142_p9)  ;;  %v193_v11 = vld [vmem:[%s1249_s1 + $0x90] sm:$0xff] (!%p142_p9)  ;;  %p165_p10 = scmp.lt.s32.totalorder (!%p142_p9), %s917_s2, 1  ;;  %vm870_vm0 = vmmov (!%p142_p9), 0   ;;  %s255_s18 = sld [smem:[#allocation2]] (!%p142_p9) }
  0x10   : > { %145 = sbr.rel (%p142_p9) target bundleno = 310 (0x136), region = 32  ;;  %v175_v2 = vld [vmem:[%s1249_s1] sm:$0xff] (!%p142_p9)  ;;  %v674_v3 = vpack.c.bf16 (!%p142_p9), %v192_v1, %v191_v0  ;;  %v176_v4 = vld [vmem:[%s1249_s1 + $0x8] sm:$0xff] (!%p142_p9)  ;;  %v194_v13 = vld [vmem:[%s1249_s1 + $0x98] sm:$0xff] (!%p142_p9)  ;;  %s162_s20 = sand.u32 (!%p142_p9), 1, %s859_s15   ;;  %vm467_vm1 = vcmask (!%p142_p9), 523264  }
  0x11   : > { %v223_v5 = vld [vmem:[%s1249_s1 + $0x180] sm:$0xff] (!%p142_p9)  ;;  %v224_v6 = vld [vmem:[%s1249_s1 + $0x188] sm:$0xff] (!%p142_p9)  ;;  %v676_v7 = vpack.c.bf16 (!%p142_p9), %v176_v4, %v175_v2  ;;  %v177_v14 = vld [vmem:[%s1249_s1 + $0x10] sm:$0xff] (!%p142_p9)  ;;  %v678_v16 = vpack.c.bf16 (!%p142_p9), %v194_v13, %v193_v11  ;;  %s546_s21 = sshll.u32 (!%p142_p9), %s162_s20, 3  ;;  %s549_s25 = sshll.u32 (!%p142_p9), %s917_s2, 7 }
  0x12   : > { %v706_v8 = vpack.c.bf16 (!%p142_p9), %v224_v6, %v223_v5  ;;  %v207_v9 = vld [vmem:[%s1249_s1 + $0x100] sm:$0xff] (!%p142_p9)  ;;  %v208_v10 = vld [vmem:[%s1249_s1 + $0x108] sm:$0xff] (!%p142_p9)  ;;  %675 = vmatprep.subr.bf16.mxu0 (!%p142_p9), %v674_v3  ;;  %v178_v15 = vld [vmem:[%s1249_s1 + $0x18] sm:$0xff] (!%p142_p9)  ;;  %s164_s26 = scalar_lea.vmem (!%p142_p9), [#allocation3], %s546_s21  ;;  %s1206_s5 = scalar_lea.hbm (!%p142_p9), %s1251_s3, %s549_s25 }
  0x13   : > { %v708_v12 = vpack.c.bf16 (!%p142_p9), %v208_v10, %v207_v9  ;;  %677 = vmatpush3.bf16.msra.mxu0 (!%p142_p9), %v676_v7  ;;  %v680_v17 = vpack.c.bf16 (!%p142_p9), %v178_v15, %v177_v14  ;;  %v225_v18 = vld [vmem:[%s1249_s1 + $0x190] sm:$0xff] (!%p142_p9)  ;;  %v226_v19 = vld [vmem:[%s1249_s1 + $0x198] sm:$0xff] (!%p142_p9)  ;;  %v195_v23 = vld [vmem:[%s1249_s1 + $0xa0] sm:$0xff] (!%p142_p9)  ;;  %s483_s27 = sshll.u32 (!%p142_p9), %s164_s26, 4  ;;  %s470_s6 = scalar_lea.sflag (!%p142_p9), [#allocation4], %s162_s20  ;;  %s1208_s27 = int_to_ptr.vmem [resolvable:$true] %s483_s27 }
  0x14   : > { %707 = vmatprep.subr.bf16.mxu1 (!%p142_p9), %v706_v8  ;;  %v209_v20 = vld [vmem:[%s1249_s1 + $0x110] sm:$0xff] (!%p142_p9)  ;;  %v710_v21 = vpack.c.bf16 (!%p142_p9), %v226_v19, %v225_v18  ;;  %v210_v22 = vld [vmem:[%s1249_s1 + $0x118] sm:$0xff] (!%p142_p9)  ;;  %v196_v24 = vld [vmem:[%s1249_s1 + $0xa8] sm:$0xff] (!%p142_p9)  ;;  %679 = vmatprep.subr.bf16.mxu0 (!%p142_p9), %v678_v16  ;;  %s805_s7 = scalar_lea.vmem (!%p142_p9), %s1208_s27, 128 }
  0x15   : > { %709 = vmatpush3.bf16.msra.mxu1 (!%p142_p9), %v708_v12  ;;  %v712_v25 = vpack.c.bf16 (!%p142_p9), %v210_v22, %v209_v20  ;;  %v682_v26 = vpack.c.bf16 (!%p142_p9), %v196_v24, %v195_v23  ;;  %v179_v27 = vld [vmem:[%s1249_s1 + $0x20] sm:$0xff] (!%p142_p9)  ;;  %v180_v28 = vld [vmem:[%s1249_s1 + $0x28] sm:$0xff] (!%p142_p9)  ;;  %v197_v35 = vld [vmem:[%s1249_s1 + $0xb0] sm:$0xff] (!%p142_p9)  ;;  %p806_p11 = scmp.ne.s32.totalorder (!%p142_p9), %s1208_s27, %s805_s7 }
  0x16   : > { %v227_v29 = vld [vmem:[%s1249_s1 + $0x1a0] sm:$0xff] (!%p142_p9)  ;;  %711 = vmatprep.subr.bf16.mxu1 (!%p142_p9), %v710_v21  ;;  %v228_v30 = vld [vmem:[%s1249_s1 + $0x1a8] sm:$0xff] (!%p142_p9)  ;;  %v684_v33 = vpack.c.bf16 (!%p142_p9), %v180_v28, %v179_v27  ;;  %v198_v36 = vld [vmem:[%s1249_s1 + $0xb8] sm:$0xff] (!%p142_p9) }
  0x17   : > { %v211_v31 = vld [vmem:[%s1249_s1 + $0x120] sm:$0xff]  ;;  %v212_v32 = vld [vmem:[%s1249_s1 + $0x128] sm:$0xff]  ;;  %681 = vmatpush3.bf16.msra.mxu0 %v680_v17  ;;  %v714_v34 = vpack.c.bf16 %v228_v30, %v227_v29  ;;  %v181_v37 = vld [vmem:[%s1249_s1 + $0x30] sm:$0xff]  ;;  %v686_v39 = vpack.c.bf16 %v198_v36, %v197_v35  ;;  %s1038_s28 = scalar_select %p165_p10, %s917_s2, 1 }
  0x18   : > { %683 = vmatprep.subr.bf16.mxu0 %v682_v26  ;;  %v716_v38 = vpack.c.bf16 %v212_v32, %v211_v31  ;;  %v182_v40 = vld [vmem:[%s1249_s1 + $0x38] sm:$0xff]  ;;  %v229_v41 = vld [vmem:[%s1249_s1 + $0x1b0] sm:$0xff]  ;;  %v199_v46 = vld [vmem:[%s1249_s1 + $0xc0] sm:$0xff]  ;;  %p807_p12 = pnand %p806_p11, %p934_p5  ;;  %s872_s2 = smov [#allocation3]  }
  0x19   : > { %713 = vmatpush3.bf16.msra.mxu1 %v712_v25  ;;  %v230_v42 = vld [vmem:[%s1249_s1 + $0x1b8] sm:$0xff]  ;;  %v213_v44 = vld [vmem:[%s1249_s1 + $0x130] sm:$0xff]  ;;  %v200_v47 = vld [vmem:[%s1249_s1 + $0xc8] sm:$0xff]  ;;  %v688_v48 = vpack.c.bf16 %v182_v40, %v181_v37  ;;  %s762_s29 = smul.u32 40, %s1038_s28  ;;  %s809_s8 = sshll.u32 %s872_s2, 4  ;;  %s810_s8 = int_to_ptr.vmem [resolvable:$false] %s809_s8 }
  0x1a   : > { %715 = vmatprep.subr.bf16.mxu1 %v714_v34  ;;  %v718_v43 = vpack.c.bf16 %v230_v42, %v229_v41  ;;  %v214_v45 = vld [vmem:[%s1249_s1 + $0x138] sm:$0xff]  ;;  %v231_v49 = vld [vmem:[%s1249_s1 + $0x1c0] sm:$0xff]  ;;  %v232_v50 = vld [vmem:[%s1249_s1 + $0x1c8] sm:$0xff]  ;;  %v690_v52 = vpack.c.bf16 %v200_v47, %v199_v46  ;;  %p808_p13 = pneg %p807_p12  ;;  %s811_s9 = scalar_lea.vmem %s810_s8, 256 }
  0x1b   : > { %685 = vmatpush3.bf16.msra.mxu0 %v684_v33  ;;  %v720_v51 = vpack.c.bf16 %v214_v45, %v213_v44  ;;  %v183_v53 = vld [vmem:[%s1249_s1 + $0x40] sm:$0xff]  ;;  %v184_v54 = vld [vmem:[%s1249_s1 + $0x48] sm:$0xff]  ;;  %v722_v56 = vpack.c.bf16 %v232_v50, %v231_v49  ;;  %v201_v58 = vld [vmem:[%s1249_s1 + $0xd0] sm:$0xff]  ;;  %s1095_s30 = scalar_lea.vmem %s1248_s0, %s762_s29  ;;  %v871_v45 = vmov 0.0   ;;  %p812_p0 = scmp.lt.s32.totalorder %s1208_s27, %s810_s8 }
  0x1c   : > { %687 = vmatprep.subr.bf16.mxu0 %v686_v39  ;;  %v215_v55 = vld [vmem:[%s1249_s1 + $0x140] sm:$0xff]  ;;  %v216_v57 = vld [vmem:[%s1249_s1 + $0x148] sm:$0xff]  ;;  %v202_v59 = vld [vmem:[%s1249_s1 + $0xd8] sm:$0xff]  ;;  %v692_v62 = vpack.c.bf16 %v184_v54, %v183_v53  ;;  %p813_p1 = scmp.lt.s32.totalorder %s811_s9, %s805_s7 }
  0x1d   : > { %717 = vmatpush3.bf16.msra.mxu1 %v716_v38  ;;  %v233_v60 = vld [vmem:[%s1249_s1 + $0x1d0] sm:$0xff]  ;;  %v234_v61 = vld [vmem:[%s1249_s1 + $0x1d8] sm:$0xff]  ;;  %v724_v63 = vpack.c.bf16 %v216_v57, %v215_v55  ;;  %v694_v0 = vpack.c.bf16 %v202_v59, %v201_v58  ;;  %v203_v6 = vld [vmem:[%s1249_s1 + $0xe0] sm:$0xff]  ;;  %v869_v38 = vmov 0.0|0.0  }
  0x1e   : > { %719 = vmatprep.subr.bf16.mxu1 %v718_v43  ;;  %v185_v1 = vld [vmem:[%s1249_s1 + $0x50] sm:$0xff]  ;;  %v186_v2 = vld [vmem:[%s1249_s1 + $0x58] sm:$0xff]  ;;  %v726_v4 = vpack.c.bf16 %v234_v61, %v233_v60  ;;  %v204_v7 = vld [vmem:[%s1249_s1 + $0xe8] sm:$0xff]  ;;  %p814_p2 = por %p813_p1, %p812_p0 }
  0x1f   : > { %689 = vmatpush3.bf16.msra.mxu0 %v688_v48  ;;  %v217_v3 = vld [vmem:[%s1249_s1 + $0x150] sm:$0xff]  ;;  %v218_v5 = vld [vmem:[%s1249_s1 + $0x158] sm:$0xff]  ;;  %v235_v8 = vld [vmem:[%s1249_s1 + $0x1e0] sm:$0xff]  ;;  %v696_v10 = vpack.c.bf16 %v186_v2, %v185_v1  ;;  %v698_v14 = vpack.c.bf16 %v204_v7, %v203_v6 }
  0x20   : > { %691 = vmatprep.subr.bf16.mxu0 %v690_v52  ;;  %v236_v9 = vld [vmem:[%s1249_s1 + $0x1e8] sm:$0xff]  ;;  %v187_v11 = vld [vmem:[%s1249_s1 + $0x60] sm:$0xff]  ;;  %v728_v13 = vpack.c.bf16 %v218_v5, %v217_v3  ;;  %v205_v19 = vld [vmem:[%s1249_s1 + $0xf0] sm:$0xff]  ;;  %p815_p3 = pnand %p814_p2, %p808_p13 }
  0x21   : > { %721 = vmatpush3.bf16.msra.mxu1 %v720_v51  ;;  %v171_v12 = vld [vmem:[%s1095_s30 + $0x8] sm:$0xff]  ;;  %v219_v16 = vld [vmem:[%s1249_s1 + $0x160] sm:$0xff]  ;;  %v730_v18 = vpack.c.bf16 %v236_v9, %v235_v8  ;;  %v206_v20 = vld [vmem:[%s1249_s1 + $0xf8] sm:$0xff] }
  0x22   : > { %723 = vmatprep.subr.bf16.mxu1 %v722_v56  ;;  %v188_v15 = vld [vmem:[%s1249_s1 + $0x68] sm:$0xff]  ;;  %321 = vmatprep.mubr.f32.mxu0 %v171_v12  ;;  %v173_v21 = vld [vmem:[%s1095_s30 + $0x18] sm:$0xff]  ;;  %v237_v22 = vld [vmem:[%s1249_s1 + $0x1f0] sm:$0xff]  ;;  %v702_v26 = vpack.c.bf16 %v206_v20, %v205_v19 }
  0x23   : > { %693 = vmatpush3.bf16.msra.mxu0 %v692_v62  ;;  %v220_v17 = vld [vmem:[%s1249_s1 + $0x168] sm:$0xff]  ;;  %v238_v23 = vld [vmem:[%s1249_s1 + $0x1f8] sm:$0xff]  ;;  %391 = vmatprep.mubr.f32.mxu1 %v173_v21  ;;  %v700_v24 = vpack.c.bf16 %v188_v15, %v187_v11  ;;  %v189_v27 = vld [vmem:[%s1249_s1 + $0x70] sm:$0xff] }
  0x24   : > { %695 = vmatprep.subr.bf16.mxu0 %v694_v0  ;;  %v732_v25 = vpack.c.bf16 %v220_v17, %v219_v16  ;;  %v190_v28 = vld [vmem:[%s1249_s1 + $0x78] sm:$0xff]  ;;  %v734_v29 = vpack.c.bf16 %v238_v23, %v237_v22  ;;  %v221_v30 = vld [vmem:[%s1249_s1 + $0x170] sm:$0xff]  ;;  %v239_v34 = vld [vmem:[%s1249_s1 + $0x200] sm:$0xff]  ;;  %v256_v0 = vstv %s255_s18 }
  0x25   : > { %725 = vmatpush3.bf16.msra.mxu1 %v724_v63  ;;  %v222_v31 = vld [vmem:[%s1249_s1 + $0x178] sm:$0xff]  ;;  %v704_v32 = vpack.c.bf16 %v190_v28, %v189_v27  ;;  %v240_v35 = vld [vmem:[%s1249_s1 + $0x208] sm:$0xff]  ;;  %v170_v36 = vld [vmem:[%s1095_s30] sm:$0xff] }
  0x26   : > { %727 = vmatprep.subr.bf16.mxu1 %v726_v4  ;;  %v736_v33 = vpack.c.bf16 %v222_v31, %v221_v30  ;;  %v739_v37 = vpack.c.bf16 %v240_v35, %v239_v34  ;;  %v172_v39 = vld [vmem:[%s1095_s30 + $0x10] sm:$0xff]  ;;  %v242_v41 = vld [vmem:[%s1249_s1 + $0x218] sm:$0xff]  ;;  %v243_v43 = vld [vmem:[%s1249_s1 + $0x220] sm:$0xff] }
  0x27   : > { %697 = vmatpush3.bf16.msra.mxu0 %v696_v10  ;;  %v241_v40 = vld [vmem:[%s1249_s1 + $0x210] sm:$0xff]  ;;  %v244_v44 = vld [vmem:[%s1249_s1 + $0x228] sm:$0xff]  ;;  %v246_v48 = vld [vmem:[%s1249_s1 + $0x238] sm:$0xff] }
  0x28   : > { %699 = vmatprep.subr.bf16.mxu0 %v698_v14  ;;  %v742_v42 = vpack.c.bf16 %v242_v41, %v241_v40  ;;  %v745_v46 = vpack.c.bf16 %v244_v44, %v243_v43  ;;  %v245_v47 = vld [vmem:[%s1249_s1 + $0x230] sm:$0xff]  ;;  %v247_v50 = vld [vmem:[%s1249_s1 + $0x240] sm:$0xff]  ;;  %v248_v51 = vld [vmem:[%s1249_s1 + $0x248] sm:$0xff] }
  0x29   : > { %729 = vmatpush3.bf16.msra.mxu1 %v728_v13  ;;  %v748_v49 = vpack.c.bf16 %v246_v48, %v245_v47  ;;  %v751_v52 = vpack.c.bf16 %v248_v51, %v247_v50  ;;  %v249_v53 = vld [vmem:[%s1249_s1 + $0x250] sm:$0xff]  ;;  %v250_v54 = vld [vmem:[%s1249_s1 + $0x258] sm:$0xff]  ;;  %v251_v56 = vld [vmem:[%s1249_s1 + $0x260] sm:$0xff] }
  0x2a   : > { %731 = vmatprep.subr.bf16.mxu1 %v730_v18  ;;  %v754_v55 = vpack.c.bf16 %v250_v54, %v249_v53  ;;  %v252_v57 = vld [vmem:[%s1249_s1 + $0x268] sm:$0xff]  ;;  %v253_v59 = vld [vmem:[%s1249_s1 + $0x270] sm:$0xff]  ;;  %v254_v60 = vld [vmem:[%s1249_s1 + $0x278] sm:$0xff] }
  0x2b   : > { %701 = vmatpush3.bf16.msra.mxu0 %v700_v24  ;;  %v757_v58 = vpack.c.bf16 %v252_v57, %v251_v56  ;;  %v760_v61 = vpack.c.bf16 %v254_v60, %v253_v59  ;;  %v174_v62 = vld [vmem:[%s1095_s30 + $0x20] sm:$0xff] }
  0x2c   : > { %703 = vmatprep.subr.bf16.mxu0 %v702_v26 }
  0x2d   : > { %733 = vmatpush3.bf16.msra.mxu1 %v732_v25 }
  0x2e   : > { %735 = vmatprep.subr.bf16.mxu1 %v734_v29 }
  0x2f   : > { %705 = vmatpush3.bf16.msra.mxu0 %v704_v32 }
  0x30   : > { %738 = vmatprep.subr.bf16.mxu0 %v869_v38 }
  0x31   : > { %737 = vmatpush3.bf16.msra.mxu1 %v736_v33 }
  0x32   : > { %322 = vmatmul.mubr.f32.vlgmr.msra.gmra.mrb[0].mxu0 %v170_v36 }
  0x33   : > { %740 = vmatpush3.bf16.msra.mxu0 %v739_v37  ;;  %671 = vmatprep.mubr.msk.f32.mxu0 %vm870_vm0, %v871_v45 }
  0x34   : > { %392 = vmatmul.mubr.f32.vlgmr.msra.gmra.mrb[0].mxu1 %v172_v39  ;;  %741 = vmatprep.subr.bf16.mxu0 %v869_v38 }
  0x37   : > { %743 = vmatpush3.bf16.msra.mxu0 %v742_v42 }
  0x38   : > { %744 = vmatprep.subr.bf16.mxu0 %v869_v38 }
  0x3b   : > { %746 = vmatpush3.bf16.msra.mxu0 %v745_v46 }
  0x3c   : > { %747 = vmatprep.subr.bf16.mxu0 %v869_v38 }
  0x3f   : > { %749 = vmatpush3.bf16.msra.mxu0 %v748_v49 }
  0x40   : > { %750 = vmatprep.subr.bf16.mxu0 %v869_v38 }
  0x43   : > { %752 = vmatpush3.bf16.msra.mxu0 %v751_v52 }
  0x44   : > { %753 = vmatprep.subr.bf16.mxu0 %v869_v38 }
  0x47   : > { %755 = vmatpush3.bf16.msra.mxu0 %v754_v55 }
  0x48   : > { %756 = vmatprep.subr.bf16.mxu0 %v869_v38 }
  0x4b   : > { %758 = vmatpush3.bf16.msra.mxu0 %v757_v58 }
  0x4c   : > { %759 = vmatprep.subr.bf16.mxu0 %v869_v38 }
  0x4f   : > { %761 = vmatpush3.bf16.msra.mxu0 %v760_v61 }
  0x52   : > { %672 = vmatmul.mubr.f32.vlgmr.msra.gmra.mrb[2].mxu0 %v174_v62 }
 0x105   : > { %v584_v63 = vpop.f32.mrb[0].mxu0 }
 0x106   : > { %v585_v1 = vpop.f32.mrb[1].mxu0 }
 0x107   : > { %v619_v2 = vpop.f32.mrb[0].mxu1  ;;  %v586_v3 = vadd.f32 %v585_v1, %v584_v63 }
 0x108   : > { %v620_v4 = vpop.f32.mrb[1].mxu1 }
 0x109   : > { %v621_v5 = vadd.f32 %v620_v4, %v619_v2  ;;  %v324_v6 = vadd.f32 %v586_v3, %v256_v0 }
 0x10b   : > { %v394_v7 = vadd.f32 %v621_v5, %v324_v6 }
 0x125   : > { %v463_v8 = vpop.f32.mrb[2].mxu0 }
 0x126   : > { %v464_v9 = vadd.f32 %v463_v8, %v394_v7  ;;  %v673_v10 = vpop.f32.mrb[3].mxu0 }
 0x128   : > { %468 = vst.msk [vmem:[%s164_s26] sm:$0xff] %vm467_vm1, %v464_v9 }
 0x129   : > { %818 = shalt.err (!%p815_p3)
}
 0x12a   : > { %s819_s10 = scalar_lea.hbm %s1206_s5, 128  ;;  %s823_s28 = scalar_lea.hbm %s1251_s3, 256 }
 0x12b   : > { %p820_p4 = scmp.ne.s32.totalorder %s1206_s5, %s819_s10  ;;  %p824_p9 = scmp.lt.u32.totalorder %s1206_s5, %s1251_s3 }
 0x12c   : > { %p825_p10 = scmp.lt.u32.totalorder %s823_s28, %s819_s10  ;;  %p827_p12 = scmp.lt.u32.totalorder %s819_s10, %s1206_s5 }
 0x12d   : > { %p821_p7 = pnand %p820_p4, %p934_p5 }
 0x12e   : > { %p826_p11 = por %p825_p10, %p824_p9 }
 0x12f   : > { %p822_p8 = pneg %p821_p7 }
 0x130   : > { %p828_p13 = por %p827_p12, %p826_p11 }
 0x132   : > { %p829_p0 = pnand %p828_p13, %p822_p8 }
 0x134   : > { %832 = shalt.err (!%p829_p0)
}
 0x135   : > { %763 = dma.vmem_to_hbm [thread:$0]  (%p934_p5), %s1208_s27, 128, %s1206_s5, %s470_s6  }
 0x136 PF: > { %p769_p1 = scmp.ge.s32.totalorder %s867_s17, 2  ;;  %s495_s18 = sand.u32 1, %s855_s14  }
 0x137   : > { %s496_s20 = scalar_lea.sflag [#allocation4], %s495_s18 }
 0x138   : > { %p766_p2 = pnand %p769_p1, %p938_p6 }
 0x13a   : > { %850 = dma.done.wait (!%p766_p2), %s496_s20, 128  }
 0x13b   : > { %852 = vsyncadd (!%p766_p2), %s496_s20, 4294967168  ;;  %p14_p3 = scmp.ge.s32.totalorder %s921_s19, 4   ;;  %s1254_s14 = smov %s859_s15 }
 0x13c   : > { %s1255_s15 = smov %s863_s16  ;;  %s1256_s16 = smov %s932_s22 }
 0x13d   : > { %s1257_s17 = smov %s921_s19  ;;  %16 = sbr.rel (!%p14_p3) target bundleno = 5 (0x5), region = 67 }
 0x144   :  { %501 = vsyncpa [#allocation4], 1 }
 0x145   :  { %503 = vsyncpa [#allocation4 + $0x1], 1 }

</bundles_post_ra>
